<compile_context>
chip_gen: v5e
topology: v5e:2x2
jax: 0.10.0
libtpu: 0.0.40
codegen_flags: <defaults>
</compile_context>

<pallas_src>
import jax
import jax.numpy as jnp
from jax.experimental import pallas as pl
from jax.experimental.pallas import tpu as pltpu


def _round_up(n, m):
    return ((n + m - 1) // m) * m


def _round_down(n, m):
    return (n // m) * m


def _linear_sigmoid_kernel(x_ref, w_ref, b_ref, o_ref):
    # x_ref: (TB, F) streamed VMEM tile (f32 or bf16)
    # w_ref: (1, F)  VMEM-resident weight (PyTorch nn.Linear layout)
    # b_ref: (1,)    SMEM-resident bias scalar
    # o_ref: (1, TB) lane-dense output tile (f32)
    x = x_ref[...].astype(jnp.float32)
    w = w_ref[...].astype(jnp.float32)              # broadcasts over rows (VPU)
    z = jnp.sum(x * w, axis=-1) + b_ref[0]          # lane reduce (XLU) -> (TB,)
    # sigmoid(z) = 0.5 * tanh(z/2) + 0.5 : whole epilogue on the EUP slot.
    o_ref[0, :] = (0.5 * jnp.tanh(0.5 * z) + 0.5).astype(o_ref.dtype)


def _choose_block_rows(B, F, itemsize):
    """Rows per tile, sized from a VMEM budget safe on v5e / v6e / v7x."""
    if B <= 128:
        # Single tile; block == full array so no 128-lane constraint applies.
        return max(8, _round_up(B, 8))
    # ~16 MiB for the double-buffered x tile fits every generation's scoped
    # VMEM default (v7x: 32 MiB) with room left for output/weight buffers.
    x_budget = 16 * 1024 * 1024
    tb_cap = _round_down(x_budget // (2 * F * itemsize), 128)
    tb = max(128, min(2048, tb_cap))
    # Keep >= 2 tiles so the "parallel" axis can shard across v7x's 2 TCs and
    # Pallas double-buffering actually overlaps DMA with compute.
    tb = min(tb, max(128, _round_up(pl.cdiv(B, 2), 128)))
    return tb


@jax.jit
def model_forward(x, weight, bias):
    """x: (B, F) f32/bf16, weight: (1, F), bias: (1, 1) -> sigmoid(x @ w.T + b), (B, 1) f32."""
    B, F = x.shape
    bias = bias.reshape((1,)).astype(jnp.float32)

    TB = _choose_block_rows(B, F, x.dtype.itemsize)
    num_tiles = pl.cdiv(B, TB)  # ragged last tile handled by Pallas: no jnp.pad copy

    # Double-buffered x tile + output tile + resident weight, plus headroom.
    footprint = 2 * (TB * F * x.dtype.itemsize + TB * 4) + 2 * F * weight.dtype.itemsize
    vmem_bytes = int(min(max(footprint + (4 << 20), 16 << 20), 96 << 20))

    cost = pl.CostEstimate(
        flops=2 * B * F,
        transcendentals=B,
        bytes_accessed=x.dtype.itemsize * B * F + 4 * (F + 1 + B),
    )

    out = pl.pallas_call(
        _linear_sigmoid_kernel,
        out_shape=jax.ShapeDtypeStruct((1, num_tiles * TB), jnp.float32),
        grid=(num_tiles,),
        in_specs=[
            pl.BlockSpec((TB, F), lambda i: (i, 0)),              # streamed x tiles
            pl.BlockSpec((1, F), lambda i: (0, 0)),               # weight stays resident
            pl.BlockSpec(memory_space=pltpu.MemorySpace.SMEM),    # bias scalar in SMEM
        ],
        out_specs=pl.BlockSpec((1, TB), lambda i: (0, i)),        # lane-dense output
        compiler_params=pltpu.CompilerParams(
            dimension_semantics=("parallel",),                    # v7x: shard tiles over 2 TCs
            vmem_limit_bytes=vmem_bytes,
        ),
        cost_estimate=cost,
    )(x, weight, bias)

    # NOTE: for extremely wide F (>~32K f32 columns) an extra "arbitrary" grid
    # axis over F with an f32 accumulator would be needed to stay inside v7x
    # VMEM; not required for typical feature counts, so kept single-block in F.
    return out[0, :B][:, None]


def reference_forward(x, weight, bias):
    return jax.nn.sigmoid(x @ weight.T + bias[0, 0])


if __name__ == "__main__":
    key = jax.random.PRNGKey(0)
    k_x, k_w, k_b = jax.random.split(key, 3)

    # Small shapes consistent with the module.
    batch, n_features = 8, 32
    x = jax.random.normal(k_x, (batch, n_features), dtype=jnp.float32)

    # Deterministic parameter init (mimics nn.Linear's U(-1/sqrt(F), 1/sqrt(F)))
    bound = 1.0 / jnp.sqrt(jnp.float32(n_features))
    weight = jax.random.uniform(k_w, (1, n_features), jnp.float32, -bound, bound)
    bias = jax.random.uniform(k_b, (1, 1), jnp.float32, -bound, bound)

    out = jax.block_until_ready(model_forward(x, weight, bias))
    ref = reference_forward(x, weight, bias)
    assert out.shape == (batch, 1)
    assert jnp.allclose(out, ref, atol=1e-5, rtol=1e-5)

    # Also exercise the multi-tile + ragged-batch path (no padding copy).
    batch2 = 300
    x2 = jax.random.normal(k_x, (batch2, n_features), dtype=jnp.float32)
    out2 = jax.block_until_ready(model_forward(x2, weight, bias))
    ref2 = reference_forward(x2, weight, bias)
    assert out2.shape == (batch2, 1)
    assert jnp.allclose(out2, ref2, atol=1e-5, rtol=1e-5)

    print("KERNEL_OK")
</pallas_src>

<mosaic_0001>
module attributes {stable_mosaic.version = 11 : i64} {
  func.func @_linear_sigmoid_kernel(%arg0: i32, %arg1: memref<8x32xf32, #tpu.memory_space<vmem>>, %arg2: memref<1x32xf32, #tpu.memory_space<vmem>>, %arg3: memref<1xf32, #tpu.memory_space<smem>>, %arg4: memref<1x8xf32, #tpu.memory_space<vmem>>) attributes {dimension_semantics = [#tpu.dimension_semantics<parallel>], iteration_bounds = array<i64: 1>, scalar_prefetch = 0 : i64, scratch_operands = 0 : i64, tpu.core_type = #tpu.core_type<tc>, window_params = [{transform_indices = @transform_0, window_bounds = array<i64: 8, 32>}, {pipeline_mode = #tpu.pipeline_mode<synchronous>, transform_indices = @transform_1, window_bounds = array<i64: 1, 32>}, {transform_indices = @transform_2, window_bounds = array<i64: 1>}, {transform_indices = @transform_3, window_bounds = array<i64: 1, 8>}]} {
    %c0 = arith.constant 0 : index
    %c0_0 = arith.constant 0 : index
    %0 = vector.load %arg1[%c0, %c0_0] : memref<8x32xf32, #tpu.memory_space<vmem>>, vector<8x32xf32>
    %c0_1 = arith.constant 0 : index
    %c0_2 = arith.constant 0 : index
    %1 = vector.load %arg2[%c0_1, %c0_2] : memref<1x32xf32, #tpu.memory_space<vmem>>, vector<1x32xf32>
    %2 = vector.broadcast %1 : vector<1x32xf32> to vector<8x32xf32>
    %3 = arith.mulf %0, %2 : vector<8x32xf32>
    %cst = arith.constant dense<0.000000e+00> : vector<8xf32>
    %4 = vector.multi_reduction <add>, %3, %cst [1] : vector<8x32xf32> to vector<8xf32>
    %c0_3 = arith.constant 0 : index
    %5 = memref.load %arg3[%c0_3] : memref<1xf32, #tpu.memory_space<smem>>
    %6 = vector.broadcast %5 : f32 to vector<8xf32>
    %7 = arith.addf %4, %6 : vector<8xf32>
    %cst_4 = arith.constant 5.000000e-01 : f32
    %8 = vector.broadcast %cst_4 : f32 to vector<8xf32>
    %9 = arith.mulf %8, %7 : vector<8xf32>
    %10 = math.tanh %9 : vector<8xf32>
    %cst_5 = arith.constant 5.000000e-01 : f32
    %11 = vector.broadcast %cst_5 : f32 to vector<8xf32>
    %12 = arith.mulf %11, %10 : vector<8xf32>
    %cst_6 = arith.constant 5.000000e-01 : f32
    %13 = vector.broadcast %cst_6 : f32 to vector<8xf32>
    %14 = arith.addf %12, %13 : vector<8xf32>
    %c0_7 = arith.constant 0 : index
    %c0_8 = arith.constant 0 : index
    %15 = vector.load %arg4[%c0_7, %c0_8] : memref<1x8xf32, #tpu.memory_space<vmem>>, vector<1x8xf32>
    %16 = vector.shape_cast %15 : vector<1x8xf32> to vector<8xf32>
    %17 = vector.shape_cast %14 : vector<8xf32> to vector<1x8xf32>
    tpu.vector_store %arg4[%c0_7, %c0_8], %17 {strides = array<i32>} : memref<1x8xf32, #tpu.memory_space<vmem>>, vector<1x8xf32>,
    return
  }
  func.func @transform_0(%arg0: i32) -> (i32, i32) {
    %c0_i32 = arith.constant 0 : i32
    %c0_i32_0 = arith.constant 0 : i32
    return %arg0, %c0_i32 : i32, i32
  }
  func.func @transform_1(%arg0: i32) -> (i32, i32) {
    %c0_i32 = arith.constant 0 : i32
    %c0_i32_0 = arith.constant 0 : i32
    %c0_i32_1 = arith.constant 0 : i32
    return %c0_i32, %c0_i32_0 : i32, i32
  }
  func.func @transform_2(%arg0: i32) -> i32 {
    %c0_i32 = arith.constant 0 : i32
    %c0_i32_0 = arith.constant 0 : i32
    return %c0_i32 : i32
  }
  func.func @transform_3(%arg0: i32) -> (i32, i32) {
    %c0_i32 = arith.constant 0 : i32
    %c0_i32_0 = arith.constant 0 : i32
    return %c0_i32, %arg0 : i32, i32
  }
}

</mosaic_0001>

<bundles_post_ra>
// kernel: model_forward.1
= control target key start
LH: loop header
LB: loop body
LE: loop exit
PB: predicated region body
PF: predicated region fallthrough
CT: control target
= control target key end

     0   :  { %9 = vsyncpa [#allocation4], 0  ;;  %s162_s0 = inlined_call_operand.hbm [shape: f32[8,32], index: 0, kind: input, shape index: {}]   ;;  %s163_s1 = inlined_call_operand.vmem [shape: f32[1,32], index: 1, kind: input, shape index: {}]   ;;  %s164_s2 = inlined_call_operand.<no memory space> [shape: f32[1], index: 2, kind: input, shape index: {}]   ;;  %s165_s3 = inlined_call_operand.hbm [shape: f32[1,8], index: 3, kind: output, shape index: {}]  }
   0x1   :  { %10 = vsyncpa [#allocation5], 0  ;;  %s16_s14 = sshll.u32 %s162_s0, 4  ;;  %s128_s15 = smov [#allocation3]   ;;  %s17_s14 = int_to_ptr.hbm [resolvable:$true] %s16_s14 }
   0x2   :  { %s18_s16 = sshll.u32 %s128_s15, 4  ;;  %s19_s16 = int_to_ptr.vmem [resolvable:$true] %s18_s16 }
   0x3   :  { %21 = dma.hbm_to_vmem [thread:$0]  %s17_s14, 128, %s19_s16, [#allocation4]  }
   0x4   :  { %124 = dma.done.wait [#allocation4], 128  }
   0x5   :  { %125 = vsyncadd [#allocation4], 4294967168  ;;  %v30_v0 = vld [vmem:[#allocation3] sm:$0xff]  ;;  %vm36_vm0 = vcmask 261120   ;;  %v41_v4 = vstv %s164_s2  ;;  %v48_v8 = vlaneseq  ;;  %s129_s0 = smov [#allocation6]   ;;  %s61_s23 = sshll.u32 %s165_s3, 4  ;;  %s62_s23 = int_to_ptr.hbm [resolvable:$true] %s61_s23 }
   0x6   :  { %v73_v1 = vld [vmem:[%s163_s1] ss:$0 sm:$0xff]  ;;  %s59_s21 = sshll.u32 %s129_s0, 4  ;;  %vm52_vm1 = vcmask 57344   ;;  %s60_s21 = int_to_ptr.vmem [resolvable:$true] %s59_s21 }
   0x7   :  { %v35_v2 = vmul.f32 %v73_v1, %v30_v0  ;;  %v49_v11 = vand.u32 127, %v48_v8 }
   0x9   :  { %v37_v3 = vsel %vm36_vm0, %v35_v2, 0.0 }
   0xa   :  { %38 = vadd.xlane.f32.xlu0 %v37_v3 }
  0x7d   :  { %v39_v5 = vpop.xlane.xlu0 %38 }
  0x7e   :  { %v42_v6 = vadd.f32 %v41_v4, %v39_v5 }
  0x80   :  { %v43_v7 = vmul.f32 0.5, %v42_v6 }
  0x82   :  { %74 = vtanh.f32 %v43_v7 }
  0x88   :  { %v75_v9 = vpop.eup %74 }
  0x89   :  { %v45_v10 = vmul.f32 0.5, %v75_v9 }
  0x8b   :  { %v46_v12 = vadd.f32 0.5, %v45_v10 }
  0x8d   :  { %v50_v13 = vperm.slane %v46_v12, %v49_v11 }
  0x8f   :  { %53 = vst.msk [vmem:[#allocation6] sm:$0x1] %vm52_vm1, %v50_v13 }
  0x90   :  { %64 = dma.vmem_to_hbm [thread:$0]  %s60_s21, 16, %s62_s23, [#allocation5]  }
  0x91   :  { %126 = dma.done.wait [#allocation5], 16  }
  0x92   :  { %127 = vsyncadd [#allocation5], 4294967280 }
  0x93   :  { %69 = vsyncpa [#allocation4], 1 }
  0x94   :  { %70 = vsyncpa [#allocation5], 1 }

</bundles_post_ra>
